<compile_context>
chip_gen: v7x
topology: tpu7x:2x2x1
jax: 0.10.0
libtpu: 0.0.40
codegen_flags: <defaults>
</compile_context>

<pallas_src>
import jax
import jax.numpy as jnp
from jax.experimental import pallas as pl
from jax.experimental.pallas import tpu as pltpu

LN_EPS = 1e-5


def _patch_merging_kernel(x_ref, w_ref, b_ref, o_ref):
    # x_ref: (rb, 2, Wh, 2C)  rb row-pair groups; axis1 = spatial-row parity;
    #                         channel layout of each half: [col-even C | col-odd C]
    # w_ref: (4C, 2Cout)      gamma-folded, channel-permuted W^T (compute dtype)
    # b_ref: (1, 2Cout)       beta @ W^T  (f32)
    # o_ref: (rb*Wh, 2Cout)
    rb, _, wh, two_c = x_ref.shape
    rows = rb * wh
    four_c = 2 * two_c

    xb = x_ref[...]
    ev = xb[:, 0, :, :]                                   # (rb, Wh, 2C) == [x0 | x2]
    od = xb[:, 1, :, :]                                   # (rb, Wh, 2C) == [x1 | x3]
    xc = jnp.concatenate([ev, od], axis=-1)               # (rb, Wh, 4C) == [x0|x2|x1|x3]
    xc = xc.reshape(rows, four_c)

    # LayerNorm statistics in f32, single pass (sum and sum of squares).
    x32 = xc.astype(jnp.float32)
    s1 = jnp.sum(x32, axis=-1, keepdims=True)
    s2 = jnp.sum(x32 * x32, axis=-1, keepdims=True)
    inv_n = 1.0 / four_c
    mean = s1 * inv_n
    var = jnp.maximum(s2 * inv_n - mean * mean, 0.0)
    xhat = (x32 - mean) * jax.lax.rsqrt(var + LN_EPS)

    # gamma already folded into w_ref, beta folded into b_ref.
    y = jnp.dot(xhat.astype(w_ref.dtype), w_ref[...],
                preferred_element_type=jnp.float32)
    y = y + b_ref[...]
    o_ref[...] = y.astype(o_ref.dtype)


def _pick_row_block(R, wh, target_rows):
    """Largest divisor rb of R with rb*wh rows per tile <= target, preferring
    sublane-aligned output blocks and a grid of >= 2 steps (v7x: 2 TCs)."""
    best_key, best_rb = None, R
    for rb in range(1, R + 1):
        if R % rb:
            continue
        rows = rb * wh
        if rows > max(target_rows, wh):
            continue
        aligned = (rows % 8 == 0) or (rb == R)   # output block 2nd-minor dim
        multi = (R // rb) >= 2                   # give both v7x cores work
        key = (aligned, multi, rows)
        if best_key is None or key > best_key:
            best_key, best_rb = key, rb
    return best_rb


def patch_merging_pallas(x, input_resolution, gamma, beta, w_reduction,
                         *, compute_dtype=jnp.bfloat16, target_rows=512):
    """x: (B, L, C), L = H*W. Returns (B, (H//2)*(W//2), 2*C)."""
    H, W = input_resolution
    B, L, C = x.shape
    assert L == H * W, "input feature has wrong size"
    assert H % 2 == 0 and W % 2 == 0, f"x size ({H}*{W}) are not even."

    R = B * (H // 2)          # number of spatial row-pairs (over all batches)
    Wh = W // 2               # number of column-pairs per row
    M = R * Wh                # output tokens
    four_c = 4 * C
    two_c_out = 2 * C

    # Free (metadata-only) view; the 2x2 merge finishes inside the kernel.
    xv = x.reshape(R, 2, Wh, 2 * C)

    # Kernel channel order is [x0 | x2 | x1 | x3]; permute W^T rows (and gamma)
    # accordingly, fold gamma into the weight and beta into a bias.
    perm = jnp.concatenate([
        jnp.arange(0 * C, 1 * C),   # x0
        jnp.arange(2 * C, 3 * C),   # x2
        jnp.arange(1 * C, 2 * C),   # x1
        jnp.arange(3 * C, 4 * C)])  # x3
    w_t = w_reduction.T.astype(jnp.float32)                       # (4C, 2Cout)
    w_eff = (gamma.astype(jnp.float32)[:, None] * w_t)[perm]
    w_eff = w_eff.astype(compute_dtype)
    bias = (beta.astype(jnp.float32) @ w_t).reshape(1, two_c_out)

    rb = _pick_row_block(R, Wh, target_rows)
    rows = rb * Wh
    grid = (R // rb,)

    # Explicit VMEM budget (v5e scoped default is 16 MiB, v7x has 64 MiB total).
    itemsize = jnp.dtype(x.dtype).itemsize
    in_bytes = rb * 2 * Wh * 2 * C * itemsize
    out_bytes = rows * two_c_out * itemsize
    w_bytes = four_c * two_c_out * jnp.dtype(compute_dtype).itemsize
    vmem_est = 2 * (in_bytes + out_bytes + w_bytes) + (1 << 20)
    vmem_limit = int(min(max(2 * vmem_est, 24 << 20), 64 << 20))

    cost = pl.CostEstimate(
        flops=2 * M * four_c * two_c_out,
        transcendentals=0,
        bytes_accessed=(M * four_c * itemsize
                        + M * two_c_out * itemsize
                        + w_bytes))

    out_flat = pl.pallas_call(
        _patch_merging_kernel,
        out_shape=jax.ShapeDtypeStruct((M, two_c_out), x.dtype),
        grid_spec=pltpu.PrefetchScalarGridSpec(
            num_scalar_prefetch=0,
            grid=grid,
            in_specs=[
                pl.BlockSpec((rb, 2, Wh, 2 * C), lambda i: (i, 0, 0, 0)),
                # Constant-index blocks are only DMA'd once by the pipeliner.
                # TODO(synk): for very large C on v7x, single-buffering this
                # weight block would free a few more MiB of VMEM.
                pl.BlockSpec((four_c, two_c_out), lambda i: (0, 0)),
                pl.BlockSpec((1, two_c_out), lambda i: (0, 0)),
            ],
            out_specs=pl.BlockSpec((rows, two_c_out), lambda i: (i, 0)),
        ),
        compiler_params=pltpu.CompilerParams(
            dimension_semantics=("parallel",),
            vmem_limit_bytes=vmem_limit),
        cost_estimate=cost,
    )(xv, w_eff, bias)

    return out_flat.reshape(B, (H // 2) * (W // 2), two_c_out)


def patch_merging_reference(x, input_resolution, gamma, beta, w_reduction):
    """Pure-JAX f32 reference mirroring the PyTorch forward."""
    H, W = input_resolution
    B, L, C = x.shape
    xv = x.reshape(B, H, W, C).astype(jnp.float32)
    x0 = xv[:, 0::2, 0::2, :]
    x1 = xv[:, 1::2, 0::2, :]
    x2 = xv[:, 0::2, 1::2, :]
    x3 = xv[:, 1::2, 1::2, :]
    xc = jnp.concatenate([x0, x1, x2, x3], axis=-1).reshape(B, -1, 4 * C)
    mean = jnp.mean(xc, axis=-1, keepdims=True)
    var = jnp.mean((xc - mean) ** 2, axis=-1, keepdims=True)
    xn = (xc - mean) * jax.lax.rsqrt(var + LN_EPS)
    xn = xn * gamma.astype(jnp.float32) + beta.astype(jnp.float32)
    return (xn @ w_reduction.T.astype(jnp.float32)).astype(x.dtype)


if __name__ == "__main__":
    # Small, forward-consistent shapes: B=2, H=W=16, dim=C=32.
    B, H, W, C = 2, 16, 16, 32
    key = jax.random.PRNGKey(0)
    kx, kg, kb, kw = jax.random.split(key, 4)

    x = jax.random.normal(kx, (B, H * W, C), dtype=jnp.float32)
    # Shapes from nn.LayerNorm(4*dim) and nn.Linear(4*dim, 2*dim, bias=False).
    gamma = 1.0 + 0.02 * jax.random.normal(kg, (4 * C,), dtype=jnp.float32)
    beta = 0.02 * jax.random.normal(kb, (4 * C,), dtype=jnp.float32)
    w_reduction = 0.05 * jax.random.normal(kw, (2 * C, 4 * C), dtype=jnp.float32)

    ref = patch_merging_reference(x, (H, W), gamma, beta, w_reduction)

    # Exact-precision path (f32 matmul): tight check of gather/LN/fold logic.
    out_f32 = patch_merging_pallas(x, (H, W), gamma, beta, w_reduction,
                                   compute_dtype=jnp.float32)
    out_f32 = jax.block_until_ready(out_f32)
    assert out_f32.shape == (B, (H // 2) * (W // 2), 2 * C), out_f32.shape
    assert jnp.allclose(out_f32, ref, atol=1e-4, rtol=1e-4), "f32 path mismatch"

    # Default fast path: bf16 MXU matmul with f32 accumulation.
    out_bf16 = patch_merging_pallas(x, (H, W), gamma, beta, w_reduction)
    out_bf16 = jax.block_until_ready(out_bf16)
    assert out_bf16.shape == (B, (H // 2) * (W // 2), 2 * C), out_bf16.shape
    assert jnp.allclose(out_bf16, ref, atol=3e-2, rtol=3e-2), "bf16 path mismatch"

    print("KERNEL_OK")
</pallas_src>

<mosaic_0001>
module attributes {stable_mosaic.version = 11 : i64} {
  func.func @_patch_merging_kernel(%arg0: i32, %arg1: memref<8x2x8x64xf32, #tpu.memory_space<vmem>>, %arg2: memref<128x64xf32, #tpu.memory_space<vmem>>, %arg3: memref<1x64xf32, #tpu.memory_space<vmem>>, %arg4: memref<64x64xf32, #tpu.memory_space<vmem>>) attributes {dimension_semantics = [#tpu.dimension_semantics<parallel>], iteration_bounds = array<i64: 2>, scalar_prefetch = 0 : i64, scratch_operands = 0 : i64, tpu.core_type = #tpu.core_type<tc>, window_params = [{transform_indices = @transform_0, window_bounds = array<i64: 8, 2, 8, 64>}, {pipeline_mode = #tpu.pipeline_mode<synchronous>, transform_indices = @transform_1, window_bounds = array<i64: 128, 64>}, {pipeline_mode = #tpu.pipeline_mode<synchronous>, transform_indices = @transform_2, window_bounds = array<i64: 1, 64>}, {transform_indices = @transform_3, window_bounds = array<i64: 64, 64>}]} {
    %c0 = arith.constant 0 : index
    %c0_0 = arith.constant 0 : index
    %c0_1 = arith.constant 0 : index
    %c0_2 = arith.constant 0 : index
    %0 = vector.load %arg1[%c0, %c0_0, %c0_1, %c0_2] : memref<8x2x8x64xf32, #tpu.memory_space<vmem>>, vector<8x2x8x64xf32>
    %1 = vector.extract_strided_slice %0 {offsets = [0, 0, 0, 0], sizes = [8, 1, 8, 64], strides = [1, 1, 1, 1]} : vector<8x2x8x64xf32> to vector<8x1x8x64xf32>
    %2 = vector.shape_cast %1 : vector<8x1x8x64xf32> to vector<8x8x64xf32>
    %3 = vector.extract_strided_slice %0 {offsets = [0, 1, 0, 0], sizes = [8, 1, 8, 64], strides = [1, 1, 1, 1]} : vector<8x2x8x64xf32> to vector<8x1x8x64xf32>
    %4 = vector.shape_cast %3 : vector<8x1x8x64xf32> to vector<8x8x64xf32>
    %5 = tpu.concatenate %2, %4 in 2 : vector<8x8x64xf32>, vector<8x8x64xf32> -> vector<8x8x128xf32>
    %6 = vector.shape_cast %5 : vector<8x8x128xf32> to vector<64x128xf32>
    %cst = arith.constant dense<0.000000e+00> : vector<64xf32>
    %7 = vector.multi_reduction <add>, %6, %cst [1] : vector<64x128xf32> to vector<64xf32>
    %8 = vector.shape_cast %7 : vector<64xf32> to vector<64x1xf32>
    %9 = arith.mulf %6, %6 : vector<64x128xf32>
    %cst_3 = arith.constant dense<0.000000e+00> : vector<64xf32>
    %10 = vector.multi_reduction <add>, %9, %cst_3 [1] : vector<64x128xf32> to vector<64xf32>
    %11 = vector.shape_cast %10 : vector<64xf32> to vector<64x1xf32>
    %cst_4 = arith.constant 7.812500e-03 : f32
    %12 = vector.broadcast %cst_4 : f32 to vector<64x1xf32>
    %13 = arith.mulf %8, %12 : vector<64x1xf32>
    %cst_5 = arith.constant 7.812500e-03 : f32
    %14 = vector.broadcast %cst_5 : f32 to vector<64x1xf32>
    %15 = arith.mulf %11, %14 : vector<64x1xf32>
    %16 = arith.mulf %13, %13 : vector<64x1xf32>
    %17 = arith.subf %15, %16 : vector<64x1xf32>
    %cst_6 = arith.constant 0.000000e+00 : f32
    %18 = vector.broadcast %cst_6 : f32 to vector<64x1xf32>
    %19 = arith.maximumf %17, %18 : vector<64x1xf32>
    %20 = vector.broadcast %13 : vector<64x1xf32> to vector<64x128xf32>
    %21 = arith.subf %6, %20 : vector<64x128xf32>
    %cst_7 = arith.constant 9.99999974E-6 : f32
    %22 = vector.broadcast %cst_7 : f32 to vector<64x1xf32>
    %23 = arith.addf %19, %22 : vector<64x1xf32>
    %24 = math.rsqrt %23 : vector<64x1xf32>
    %25 = vector.broadcast %24 : vector<64x1xf32> to vector<64x128xf32>
    %26 = arith.mulf %21, %25 : vector<64x128xf32>
    %c0_8 = arith.constant 0 : index
    %c0_9 = arith.constant 0 : index
    %27 = vector.load %arg2[%c0_8, %c0_9] : memref<128x64xf32, #tpu.memory_space<vmem>>, vector<128x64xf32>
    %cst_10 = arith.constant dense<0.000000e+00> : vector<64x64xf32>
    %28 = tpu.matmul %26, %27, %cst_10 {dimension_numbers = #tpu.dot_dimension_numbers<[1], [0], [0], [1], [0, 0, 1, 1], [], []>} : vector<64x128xf32>, vector<128x64xf32>, vector<64x64xf32> -> vector<64x64xf32>
    %c0_11 = arith.constant 0 : index
    %c0_12 = arith.constant 0 : index
    %29 = vector.load %arg3[%c0_11, %c0_12] : memref<1x64xf32, #tpu.memory_space<vmem>>, vector<1x64xf32>
    %30 = vector.broadcast %29 : vector<1x64xf32> to vector<64x64xf32>
    %31 = arith.addf %28, %30 : vector<64x64xf32>
    %c0_13 = arith.constant 0 : index
    %c0_14 = arith.constant 0 : index
    %32 = vector.load %arg4[%c0_13, %c0_14] : memref<64x64xf32, #tpu.memory_space<vmem>>, vector<64x64xf32>
    tpu.vector_store %arg4[%c0_13, %c0_14], %31 {strides = array<i32>} : memref<64x64xf32, #tpu.memory_space<vmem>>, vector<64x64xf32>,
    return
  }
  func.func @transform_0(%arg0: i32) -> (i32, i32, i32, i32) {
    %c0_i32 = arith.constant 0 : i32
    %c0_i32_0 = arith.constant 0 : i32
    %c0_i32_1 = arith.constant 0 : i32
    %c0_i32_2 = arith.constant 0 : i32
    return %arg0, %c0_i32, %c0_i32_0, %c0_i32_1 : i32, i32, i32, i32
  }
  func.func @transform_1(%arg0: i32) -> (i32, i32) {
    %c0_i32 = arith.constant 0 : i32
    %c0_i32_0 = arith.constant 0 : i32
    %c0_i32_1 = arith.constant 0 : i32
    return %c0_i32, %c0_i32_0 : i32, i32
  }
  func.func @transform_2(%arg0: i32) -> (i32, i32) {
    %c0_i32 = arith.constant 0 : i32
    %c0_i32_0 = arith.constant 0 : i32
    %c0_i32_1 = arith.constant 0 : i32
    return %c0_i32, %c0_i32_0 : i32, i32
  }
  func.func @transform_3(%arg0: i32) -> (i32, i32) {
    %c0_i32 = arith.constant 0 : i32
    %c0_i32_0 = arith.constant 0 : i32
    return %arg0, %c0_i32 : i32, i32
  }
}

</mosaic_0001>

<bundles_post_ra>
// kernel: tpu_custom_call.1
= control target key start
LH: loop header
LB: loop body
LE: loop exit
PB: predicated region body
PF: predicated region fallthrough
CT: control target
= control target key end

     0   :  { %8 = vsyncpa [#allocation3], 0  ;;  %s1117_s0 = inlined_call_operand.hbm [shape: f32[16,2,8,64], index: 0, kind: input, shape index: {}]   ;;  %s1118_s1 = inlined_call_operand.vmem [shape: f32[128,64], index: 1, kind: input, shape index: {}]   ;;  %s1119_s2 = inlined_call_operand.vmem [shape: f32[1,64], index: 2, kind: input, shape index: {}]   ;;  %s1120_s3 = inlined_call_operand.vmem [shape: f32[128,64], index: 3, kind: output, shape index: {}]  }
   0x1   :  { %10 = vsyncpa [#allocation3 + $0x1], 0  ;;  %s847_s12 = smov 0   ;;  %s849_s13 = smov 0  }
   0x2   :  { %s851_s14 = smov 0   ;;  %s853_s15 = smov 0  }
   0x3 LB: > { %s566_s16 = sadd.s32 4294967295, %s821_s15   ;;  %s867_s17 = sadd.s32 1, %s821_s15   ;;  %s821_s15 = sphi %s853_s15, %s1127_s15   ;;  %s817_s14 = sphi %s851_s14, %s1126_s14   ;;  %s813_s13 = sphi %s849_s13, %s1125_s13   ;;  %s809_s12 = sphi %s847_s12, %s1124_s12  }
   0x4   : > { %s20_s18 = ssub.s32 %s821_s15, %s867_s17  ;;  %s23_s19 = sadd.s32 1, %s817_s14 }
   0x5   : > { %p21_p0 = scmp.eq.s32.totalorder %s20_s18, 0  ;;  %p30_p1 = scmp.ne.s32.totalorder %s817_s14, %s813_s13 }
   0x6   : > { %p31_p2 = scmp.eq.s32.totalorder %s821_s15, 0  ;;  %p36_p3 = scmp.ne.s32.totalorder %s813_s13, %s809_s12 }
   0x7   : > { %s877_s20 = scalar_select %p21_p0, %s817_s14, %s23_s19  }
   0x8   : > { %p32_p4 = por %p31_p2, %p30_p1  ;;  %p37_p5 = scmp.eq.s32.totalorder %s566_s16, 0 }
   0x9   : > { %p705_p6 = scmp.lt.s32.totalorder %s821_s15, 2  ;;  %s134_s22 = sand.u32 1, %s817_s14  }
   0xa   : > { %p882_p7 = por %p37_p5, %p36_p3  ;;  %s570_s23 = sshll.u32 %s134_s22, 7 }
   0xb   : > { %s582_s24 = sshll.u32 %s821_s15, 11  ;;  %s138_s28 = scalar_lea.vmem [#allocation2], %s570_s23 }
   0xc   : > { %s891_s27 = scalar_lea.hbm %s1117_s0, %s582_s24  ;;  %s146_s29 = sshll.u32 %s138_s28, 4  ;;  %s893_s29 = int_to_ptr.vmem [resolvable:$true] %s146_s29 }
   0xd   : > { %p895_p8 = pnand %p705_p6, %p32_p4  ;;  %s900_s4 = scalar_lea.sflag [#allocation3], %s134_s22 }
   0xe   : > { %s757_s5 = scalar_lea.hbm %s891_s27, 2048  ;;  %s762_s8 = scalar_lea.hbm %s1117_s0, 4096 }
   0xf   : > { %p758_p10 = scmp.ne.s32.totalorder %s891_s27, %s757_s5  ;;  %p759_p11 = pneg %p895_p8 }
  0x10   : > { %p763_p0 = scmp.lt.u32.totalorder %s891_s27, %s1117_s0  ;;  %p764_p1 = scmp.lt.u32.totalorder %s762_s8, %s757_s5 }
  0x11   : > { %p760_p12 = pnand %p759_p11, %p758_p10  ;;  %p766_p3 = scmp.lt.u32.totalorder %s757_s5, %s891_s27 }
  0x12   : > { %p765_p2 = por %p764_p1, %p763_p0 }
  0x13   : > { %p761_p13 = pneg %p760_p12 }
  0x14   : > { %p767_p4 = por %p766_p3, %p765_p2 }
  0x16   : > { %p768_p5 = pnand %p767_p4, %p761_p13 }
  0x18   : > { %771 = shalt.err (!%p768_p5)
}
  0x19   : > { %s772_s11 = scalar_lea.vmem %s893_s29, 2048  ;;  %s823_s12 = smov [#allocation2]  }
  0x1a   : > { %p773_p6 = scmp.ne.s32.totalorder %s893_s29, %s772_s11  ;;  %s777_s18 = sshll.u32 %s823_s12, 4  ;;  %s778_s18 = int_to_ptr.vmem [resolvable:$false] %s777_s18 }
  0x1b   : > { %s779_s19 = scalar_lea.vmem %s778_s18, 4096  ;;  %p780_p9 = scmp.lt.s32.totalorder %s893_s29, %s778_s18 }
  0x1c   : > { %p775_p10 = pnand %p773_p6, %p759_p11  ;;  %p781_p0 = scmp.lt.s32.totalorder %s779_s19, %s772_s11 }
  0x1e   : > { %p776_p12 = pneg %p775_p10  ;;  %p782_p1 = por %p781_p0, %p780_p9 }
  0x20   : > { %p783_p2 = pnand %p782_p1, %p776_p12 }
  0x22   : > { %786 = shalt.err (!%p783_p2)
}
  0x23   : > { %s824_s22 = smov 128   ;;  %s825_s23 = smov 8  }
  0x24   : > { %704 = dma.hbm_to_vmem [thread:$0]  (!%p895_p8), %s891_s27, 2048, %s893_s29, %s900_s4, %s824_s22, %s824_s22, %s825_s23  }
  0x25   : > { %p154_p11 = scmp.lt.s32.totalorder %s821_s15, 3  ;;  %p1123_p13 = scmp.ge.s32.totalorder %s821_s15, 1 }
  0x27   : > { %p155_p3 = pnand %p1123_p13, %p154_p11 }
  0x28   : > { %s160_s24 = sand.u32 (!%p155_p3), 1, %s813_s13  }
  0x29   : > { %158 = sbr.rel (%p155_p3) target bundleno = 577 (0x241), region = 32  ;;  %s575_s25 = sshll.u32 (!%p155_p3), %s160_s24, 7 }
  0x2a   : > { %s161_s26 = scalar_lea.sflag (!%p155_p3), [#allocation3], %s160_s24  ;;  %s932_s28 = scalar_lea.vmem (!%p155_p3), [#allocation2], %s575_s25 }
  0x30   : > { %804 = dma.done.wait (%p882_p7), %s161_s26, 2048  }
  0x31   : > { %806 = vsyncadd (%p882_p7), %s161_s26, 4294965248  ;;  %v195_v0 = vld [vmem:[%s932_s28 + $0x8] sm:$0xff]  ;;  %v197_v1 = vld [vmem:[%s932_s28 + $0x18] sm:$0xff]  ;;  %s826_s27 = smov 64   ;;  %vm242_vm0 = vcmask 523264   ;;  %s576_s12 = sshll.u32 %s566_s16, 3 }
  0x32   : > { %218 = vrot.lane.b32.xlu0 %v195_v0, %s826_s27  ;;  %220 = vrot.lane.b32.xlu1 %v197_v1, %s826_s27  ;;  %v203_v2 = vld [vmem:[%s932_s28 + $0x48] sm:$0xff]  ;;  %v205_v3 = vld [vmem:[%s932_s28 + $0x58] sm:$0xff]  ;;  %p189_p7 = scmp.lt.s32.totalorder %s576_s12, 15 }
  0x33   : > { %v199_v4 = vld [vmem:[%s932_s28 + $0x28] sm:$0xff]  ;;  %v201_v6 = vld [vmem:[%s932_s28 + $0x38] sm:$0xff]  ;;  %v194_v8 = vld [vmem:[%s932_s28] sm:$0xff] }
  0x34   : > { %v207_v5 = vld [vmem:[%s932_s28 + $0x68] sm:$0xff]  ;;  %v209_v7 = vld [vmem:[%s932_s28 + $0x78] sm:$0xff]  ;;  %v196_v11 = vld [vmem:[%s932_s28 + $0x10] sm:$0xff]  ;;  %s1129_s12 = smov (!%p189_p7, %s576_s12), 15 }
  0x35   : > { %v202_v13 = vld [vmem:[%s932_s28 + $0x40] sm:$0xff]  ;;  %v204_v17 = vld [vmem:[%s932_s28 + $0x50] sm:$0xff]  ;;  %v364_v36 = vld [vmem:[%s1118_s1 + $0x8] sm:$0xff]  ;;  %s577_s18 = sshll.u32 %s1129_s12, 3 }
  0x36   : > { %226 = vrot.lane.b32.xlu0 %v203_v2, %s826_s27  ;;  %228 = vrot.lane.b32.xlu1 %v205_v3, %s826_s27  ;;  %v198_v19 = vld [vmem:[%s932_s28 + $0x20] sm:$0xff]  ;;  %v200_v25 = vld [vmem:[%s932_s28 + $0x30] sm:$0xff]  ;;  %s192_s25 = scalar_lea.vmem %s1120_s3, %s577_s18 }
  0x37   : > { %v206_v23 = vld [vmem:[%s932_s28 + $0x60] sm:$0xff]  ;;  %v208_v29 = vld [vmem:[%s932_s28 + $0x70] sm:$0xff]  ;;  %v366_v41 = vld [vmem:[%s1118_s1 + $0x18] sm:$0xff] }
  0x38   : > { %v363_v35 = vld [vmem:[%s1118_s1] sm:$0xff]  ;;  %v365_v40 = vld [vmem:[%s1118_s1 + $0x10] sm:$0xff]  ;;  %v368_v46 = vld [vmem:[%s1118_s1 + $0x28] sm:$0xff] }
  0x39   : > { %v651_v37 = vpack.c.bf16 %v364_v36, %v363_v35  ;;  %v655_v42 = vpack.c.bf16 %v366_v41, %v365_v40  ;;  %v367_v45 = vld [vmem:[%s1118_s1 + $0x20] sm:$0xff]  ;;  %v369_v49 = vld [vmem:[%s1118_s1 + $0x30] sm:$0xff]  ;;  %v370_v50 = vld [vmem:[%s1118_s1 + $0x38] sm:$0xff] }
  0x3a   : > { %222 = vrot.lane.b32.xlu0 %v199_v4, %s826_s27  ;;  %230 = vrot.lane.b32.xlu1 %v207_v5, %s826_s27  ;;  %v659_v47 = vpack.c.bf16 %v368_v46, %v367_v45  ;;  %v663_v51 = vpack.c.bf16 %v370_v50, %v369_v49  ;;  %v371_v52 = vld [vmem:[%s1118_s1 + $0x40] sm:$0xff]  ;;  %v372_v53 = vld [vmem:[%s1118_s1 + $0x48] sm:$0xff] }
  0x3b   : > { %652 = vmatprep.subr.bf16.mxu0 %v651_v37  ;;  %683 = vmatprep.subr.bf16.mxu1 %v651_v37  ;;  %v667_v54 = vpack.c.bf16 %v372_v53, %v371_v52  ;;  %v373_v55 = vld [vmem:[%s1118_s1 + $0x50] sm:$0xff]  ;;  %v374_v56 = vld [vmem:[%s1118_s1 + $0x58] sm:$0xff]  ;;  %v375_v58 = vld [vmem:[%s1118_s1 + $0x60] sm:$0xff] }
  0x3c   : > { %654 = vmatpush3.bf16.msra.mxu0 %v651_v37  ;;  %691 = vmatpush3.bf16.msra.mxu1 %v651_v37  ;;  %v671_v57 = vpack.c.bf16 %v374_v56, %v373_v55  ;;  %v376_v59 = vld [vmem:[%s1118_s1 + $0x68] sm:$0xff]  ;;  %v377_v61 = vld [vmem:[%s1118_s1 + $0x70] sm:$0xff]  ;;  %v378_v62 = vld [vmem:[%s1118_s1 + $0x78] sm:$0xff] }
  0x3d   : > { %656 = vmatprep.subr.bf16.mxu0 %v655_v42  ;;  %684 = vmatprep.subr.bf16.mxu1 %v655_v42  ;;  %v675_v60 = vpack.c.bf16 %v376_v59, %v375_v58  ;;  %v679_v63 = vpack.c.bf16 %v378_v62, %v377_v61 }
  0x3e   : > { %224 = vrot.lane.b32.xlu0 %v201_v6, %s826_s27  ;;  %232 = vrot.lane.b32.xlu1 %v209_v7, %s826_s27 }
  0x40   : > { %658 = vmatpush3.bf16.msra.mxu0 %v655_v42  ;;  %692 = vmatpush3.bf16.msra.mxu1 %v655_v42 }
  0x41   : > { %660 = vmatprep.subr.bf16.mxu0 %v659_v47  ;;  %685 = vmatprep.subr.bf16.mxu1 %v659_v47 }
  0x44   : > { %662 = vmatpush3.bf16.msra.mxu0 %v659_v47  ;;  %693 = vmatpush3.bf16.msra.mxu1 %v659_v47 }
  0x45   : > { %664 = vmatprep.subr.bf16.mxu0 %v663_v51  ;;  %686 = vmatprep.subr.bf16.mxu1 %v663_v51 }
  0x48   : > { %666 = vmatpush3.bf16.msra.mxu0 %v663_v51  ;;  %694 = vmatpush3.bf16.msra.mxu1 %v663_v51 }
  0x49   : > { %668 = vmatprep.subr.bf16.mxu0 %v667_v54  ;;  %687 = vmatprep.subr.bf16.mxu1 %v667_v54 }
  0x4c   : > { %670 = vmatpush3.bf16.msra.mxu0 %v667_v54  ;;  %695 = vmatpush3.bf16.msra.mxu1 %v667_v54 }
  0x4d   : > { %672 = vmatprep.subr.bf16.mxu0 %v671_v57  ;;  %688 = vmatprep.subr.bf16.mxu1 %v671_v57 }
  0x50   : > { %674 = vmatpush3.bf16.msra.mxu0 %v671_v57  ;;  %696 = vmatpush3.bf16.msra.mxu1 %v671_v57 }
  0x51   : > { %676 = vmatprep.subr.bf16.mxu0 %v675_v60  ;;  %689 = vmatprep.subr.bf16.mxu1 %v675_v60 }
  0x54   : > { %678 = vmatpush3.bf16.msra.mxu0 %v675_v60  ;;  %697 = vmatpush3.bf16.msra.mxu1 %v675_v60 }
  0x55   : > { %680 = vmatprep.subr.bf16.mxu0 %v679_v63  ;;  %690 = vmatprep.subr.bf16.mxu1 %v679_v63 }
  0x58   : > { %682 = vmatpush3.bf16.msra.mxu0 %v679_v63  ;;  %698 = vmatpush3.bf16.msra.mxu1 %v679_v63 }
  0xa4   : > { %v219_v9 = vpop.permute.xlu0 %218  ;;  %v221_v10 = vpop.permute.xlu1 %220 }
  0xa5   : > { %v949_v12 = vsel %vm242_vm0, %v194_v8, %v219_v9  ;;  %v954_v14 = vsel %vm242_vm0, %v196_v11, %v221_v10 }
  0xa6   : > { %251 = vadd.xlane.f32.xlu0 %v949_v12  ;;  %v267_v32 = vmul.f32 %v949_v12, %v949_v12  ;;  %v268_v34 = vmul.f32 %v954_v14, %v954_v14 }
  0xa8   : > { %v227_v15 = vpop.permute.xlu0 %226  ;;  %v229_v16 = vpop.permute.xlu1 %228 }
  0xa9   : > { %v958_v18 = vsel %vm242_vm0, %v202_v13, %v227_v15  ;;  %v964_v20 = vsel %vm242_vm0, %v204_v17, %v229_v16 }
  0xaa   : > { %259 = vadd.xlane.f32.xlu1 %v958_v18  ;;  %253 = vadd.xlane.f32.xlu0 %v954_v14  ;;  %v271_v33 = vmul.f32 %v958_v18, %v958_v18  ;;  %v272_v38 = vmul.f32 %v964_v20, %v964_v20 }
  0xac   : > { %v223_v21 = vpop.permute.xlu0 %222  ;;  %v231_v22 = vpop.permute.xlu1 %230 }
  0xad   : > { %v968_v24 = vsel %vm242_vm0, %v198_v19, %v223_v21  ;;  %v974_v26 = vsel %vm242_vm0, %v206_v23, %v231_v22 }
  0xae   : > { %255 = vadd.xlane.f32.xlu1 %v968_v24  ;;  %261 = vadd.xlane.f32.xlu0 %v964_v20  ;;  %v269_v39 = vmul.f32 %v968_v24, %v968_v24  ;;  %v273_v43 = vmul.f32 %v974_v26, %v974_v26 }
  0xb0   : > { %v225_v27 = vpop.permute.xlu0 %224  ;;  %v233_v28 = vpop.permute.xlu1 %232 }
  0xb1   : > { %v978_v30 = vsel %vm242_vm0, %v200_v25, %v225_v27  ;;  %v983_v31 = vsel %vm242_vm0, %v208_v29, %v233_v28 }
  0xb2   : > { %257 = vadd.xlane.f32.xlu1 %v978_v30  ;;  %263 = vadd.xlane.f32.xlu0 %v974_v26  ;;  %v270_v44 = vmul.f32 %v978_v30, %v978_v30  ;;  %v274_v48 = vmul.f32 %v983_v31, %v983_v31 }
  0xb6   : > { %265 = vadd.xlane.f32.xlu0 %v983_v31  ;;  %275 = vadd.xlane.f32.xlu1 %v267_v32 }
  0xba   : > { %283 = vadd.xlane.f32.xlu0 %v271_v33  ;;  %277 = vadd.xlane.f32.xlu1 %v268_v34 }
  0xbe   : > { %285 = vadd.xlane.f32.xlu0 %v272_v38  ;;  %279 = vadd.xlane.f32.xlu1 %v269_v39 }
  0xc2   : > { %287 = vadd.xlane.f32.xlu0 %v273_v43  ;;  %281 = vadd.xlane.f32.xlu1 %v270_v44 }
  0xc6   : > { %289 = vadd.xlane.f32.xlu0 %v274_v48 }
 0x133   : > { %v252_v0 = vpop.xlane.xlu0 %251 }
 0x134   : > { %v1050_v7 = vmul.f32 0.0078125, %v252_v0 }
 0x136   : > { %v307_v10 = vmul.f32 %v1050_v7, %v1050_v7 }
 0x137   : > { %v260_v1 = vpop.xlane.xlu1 %259  ;;  %v254_v2 = vpop.xlane.xlu0 %253 }
 0x138   : > { %v1054_v11 = vmul.f32 0.0078125, %v254_v2  ;;  %v1056_v15 = vmul.f32 0.0078125, %v260_v1 }
 0x13a   : > { %v311_v17 = vmul.f32 %v1056_v15, %v1056_v15  ;;  %v308_v23 = vmul.f32 %v1054_v11, %v1054_v11 }
 0x13b   : > { %v256_v3 = vpop.xlane.xlu1 %255  ;;  %v262_v4 = vpop.xlane.xlu0 %261 }
 0x13c   : > { %v1060_v19 = vmul.f32 0.0078125, %v262_v4  ;;  %v1064_v34 = vmul.f32 0.0078125, %v256_v3  ;;  %v331_v3 = vsub.f32 %v949_v12, %v1050_v7 }
 0x13e   : > { %v312_v35 = vmul.f32 %v1060_v19, %v1060_v19  ;;  %v309_v42 = vmul.f32 %v1064_v34, %v1064_v34  ;;  %v336_v7 = vsub.f32 %v964_v20, %v1060_v19 }
 0x13f   : > { %v258_v5 = vpop.xlane.xlu1 %257  ;;  %v264_v6 = vpop.xlane.xlu0 %263 }
 0x140   : > { %v1068_v36 = vmul.f32 0.0078125, %v264_v6  ;;  %v294_v43 = vmul.f32 0.0078125, %v258_v5 }
 0x142   : > { %v310_v48 = vmul.f32 %v294_v43, %v294_v43  ;;  %v313_v49 = vmul.f32 %v1068_v36, %v1068_v36 }
 0x143   : > { %v266_v8 = vpop.xlane.xlu0 %265  ;;  %v276_v9 = vpop.xlane.xlu1 %275 }
 0x144   : > { %v299_v13 = vmul.f32 0.0078125, %v276_v9  ;;  %v298_v50 = vmul.f32 0.0078125, %v266_v8 }
 0x146   : > { %v315_v16 = vsub.f32 %v299_v13, %v307_v10  ;;  %v314_v61 = vmul.f32 %v298_v50, %v298_v50  ;;  %v335_v13 = vsub.f32 %v958_v18, %v1056_v15 }
 0x147   : > { %v284_v21 = vpop.xlane.xlu0 %283  ;;  %v278_v22 = vpop.xlane.xlu1 %277 }
 0x148   : > { %v323_v25 = vmax.f32 %v315_v16, 0.0  ;;  %v303_v27 = vmul.f32 0.0078125, %v284_v21  ;;  %v300_v28 = vmul.f32 0.0078125, %v278_v22 }
 0x14a   : > { %v339_v29 = vadd.f32 1e-05, %v323_v25  ;;  %v319_v32 = vsub.f32 %v303_v27, %v311_v17  ;;  %v316_v33 = vsub.f32 %v300_v28, %v308_v23  ;;  %v332_v17 = vsub.f32 %v954_v14, %v1054_v11 }
 0x14b   : > { %v286_v37 = vpop.xlane.xlu0 %285  ;;  %v280_v38 = vpop.xlane.xlu1 %279  ;;  %v333_v27 = vsub.f32 %v968_v24, %v1064_v34  ;;  %v337_v14 = vsub.f32 %v974_v26, %v1068_v36  ;;  %v578_v26 = vld [vmem:[%s1119_s2] ss:$0 sm:$0xff] }
 0x14c   : > { %741 = vrsqrt.f32 %v339_v29  ;;  %v327_v39 = vmax.f32 %v319_v32, 0.0  ;;  %v324_v40 = vmax.f32 %v316_v33, 0.0  ;;  %v304_v41 = vmul.f32 0.0078125, %v286_v37 }
 0x14d   : > { %v301_v44 = vmul.f32 0.0078125, %v280_v38  ;;  %v334_v29 = vsub.f32 %v978_v30, %v294_v43  ;;  %v338_v33 = vsub.f32 %v983_v31, %v298_v50 }
 0x14e   : > { %v343_v45 = vadd.f32 1e-05, %v327_v39  ;;  %v340_v46 = vadd.f32 1e-05, %v324_v40  ;;  %v320_v47 = vsub.f32 %v304_v41, %v312_v35 }
 0x14f   : > { %v317_v51 = vsub.f32 %v301_v44, %v309_v42  ;;  %v288_v52 = vpop.xlane.xlu0 %287  ;;  %v282_v53 = vpop.xlane.xlu1 %281 }
 0x150   : > { %743 = vrsqrt.f32 %v343_v45  ;;  %v328_v54 = vmax.f32 %v320_v47, 0.0  ;;  %v305_v55 = vmul.f32 0.0078125, %v288_v52  ;;  %v302_v56 = vmul.f32 0.0078125, %v282_v53 }
 0x151   : > { %745 = vrsqrt.f32 %v340_v46  ;;  %v325_v57 = vmax.f32 %v317_v51, 0.0 }
 0x152   : > { %v344_v58 = vadd.f32 1e-05, %v328_v54  ;;  %v321_v59 = vsub.f32 %v305_v55, %v313_v49  ;;  %v318_v60 = vsub.f32 %v302_v56, %v310_v48 }
 0x153   : > { %v341_v62 = vadd.f32 1e-05, %v325_v57  ;;  %v290_v63 = vpop.xlane.xlu0 %289 }
 0x154   : > { %747 = vrsqrt.f32 %v344_v58  ;;  %v329_v0 = vmax.f32 %v321_v59, 0.0  ;;  %v326_v1 = vmax.f32 %v318_v60, 0.0  ;;  %v306_v2 = vmul.f32 0.0078125, %v290_v63 }
 0x155   : > { %749 = vrsqrt.f32 %v341_v62 }
 0x156   : > { %v742_v4 = vpop.eup %741  ;;  %v345_v5 = vadd.f32 1e-05, %v329_v0  ;;  %v342_v6 = vadd.f32 1e-05, %v326_v1  ;;  %v322_v8 = vsub.f32 %v306_v2, %v314_v61 }
 0x157   : > { %v355_v9 = vmul.f32 %v742_v4, %v331_v3 }
 0x158   : > { %751 = vrsqrt.f32 %v345_v5  ;;  %v330_v10 = vmax.f32 %v322_v8, 0.0 }
 0x159   : > { %753 = vrsqrt.f32 %v342_v6  ;;  %639 = vmatprep.mubr.f32.mxu0 %v355_v9 }
 0x15a   : > { %v744_v16 = vpop.eup %743  ;;  %v346_v21 = vadd.f32 1e-05, %v330_v10 }
 0x15b   : > { %v746_v22 = vpop.eup %745  ;;  %v359_v23 = vmul.f32 %v744_v16, %v335_v13 }
 0x15c   : > { %755 = vrsqrt.f32 %v346_v21  ;;  %v356_v12 = vmul.f32 %v746_v22, %v332_v17 }
 0x15d   : > { %645 = vmatprep.mubr.f32.mxu1 %v359_v23 }
 0x15e   : > { %v748_v25 = vpop.eup %747  ;;  %640 = vmatmul.mubr.f32.vlgmr.msra.gmra.mrb[0].mxu0 %v356_v12 }
 0x15f   : > { %v750_v28 = vpop.eup %749  ;;  %v360_v18 = vmul.f32 %v748_v25, %v336_v7 }
 0x160   : > { %v357_v15 = vmul.f32 %v750_v28, %v333_v27 }
 0x161   : > { %646 = vmatmul.mubr.f32.vlgmr.msra.gmra.mrb[0].mxu1 %v360_v18 }
 0x162   : > { %v752_v11 = vpop.eup %751  ;;  %642 = vmatprep.mubr.f32.mxu0 %v357_v15 }
 0x163   : > { %v754_v32 = vpop.eup %753  ;;  %v361_v20 = vmul.f32 %v752_v11, %v337_v14 }
 0x164   : > { %v358_v19 = vmul.f32 %v754_v32, %v334_v29 }
 0x165   : > { %648 = vmatprep.mubr.f32.mxu1 %v361_v20 }
 0x166   : > { %v756_v24 = vpop.eup %755  ;;  %643 = vmatmul.mubr.f32.gmra.mrb[2].mxu0 %v358_v19 }
 0x167   : > { %v362_v34 = vmul.f32 %v756_v24, %v338_v33 }
 0x169   : > { %649 = vmatmul.mubr.f32.gmra.mrb[2].mxu1 %v362_v34 }
 0x231   : > { %v641_v30 = vpop.f32.mrb[0].mxu0 }
 0x232   : > { %v458_v31 = vadd.f32 %v641_v30, %v578_v26  ;;  %v452_v35 = vpop.f32.mrb[1].mxu0 }
 0x233   : > { %v453_v36 = vadd.f32 %v578_v26, %v452_v35 }
 0x234   : > { %492 = vst.msk [vmem:[%s192_s25 + $0x8] sm:$0xff] %vm242_vm0, %v458_v31  ;;  %v647_v37 = vpop.f32.mrb[0].mxu1 }
 0x235   : > { %491 = vst.msk [vmem:[%s192_s25] sm:$0xff] %vm242_vm0, %v453_v36  ;;  %v478_v38 = vadd.f32 %v647_v37, %v578_v26  ;;  %v472_v39 = vpop.f32.mrb[1].mxu1 }
 0x236   : > { %v473_v40 = vadd.f32 %v578_v26, %v472_v39 }
 0x237   : > { %496 = vst.msk [vmem:[%s192_s25 + $0x28] sm:$0xff] %vm242_vm0, %v478_v38 }
 0x238   : > { %495 = vst.msk [vmem:[%s192_s25 + $0x20] sm:$0xff] %vm242_vm0, %v473_v40 }
 0x239   : > { %v644_v41 = vpop.f32.mrb[2].mxu0 }
 0x23a   : > { %v468_v42 = vadd.f32 %v644_v41, %v578_v26  ;;  %v462_v43 = vpop.f32.mrb[3].mxu0 }
 0x23b   : > { %v463_v44 = vadd.f32 %v578_v26, %v462_v43 }
 0x23c   : > { %494 = vst.msk [vmem:[%s192_s25 + $0x18] sm:$0xff] %vm242_vm0, %v468_v42  ;;  %v650_v45 = vpop.f32.mrb[2].mxu1 }
 0x23d   : > { %493 = vst.msk [vmem:[%s192_s25 + $0x10] sm:$0xff] %vm242_vm0, %v463_v44  ;;  %v488_v46 = vadd.f32 %v650_v45, %v578_v26  ;;  %v482_v47 = vpop.f32.mrb[3].mxu1 }
 0x23e   : > { %v483_v48 = vadd.f32 %v578_v26, %v482_v47 }
 0x23f   : > { %498 = vst.msk [vmem:[%s192_s25 + $0x38] sm:$0xff] %vm242_vm0, %v488_v46 }
 0x240   : > { %497 = vst.msk [vmem:[%s192_s25 + $0x30] sm:$0xff] %vm242_vm0, %v483_v48 }
 0x241 PF: > { %p13_p8 = scmp.ge.s32.totalorder %s867_s17, 4   ;;  %s1124_s12 = smov %s813_s13 }
 0x242   : > { %s1125_s13 = smov %s817_s14  ;;  %s1126_s14 = smov %s877_s20 }
 0x243   : > { %s1127_s15 = smov %s867_s17  ;;  %15 = sbr.rel (!%p13_p8) target bundleno = 3 (0x3), region = 72 }
 0x24a   :  { %521 = vsyncpa [#allocation3], 1 }
 0x24b   :  { %523 = vsyncpa [#allocation3 + $0x1], 1 }

</bundles_post_ra>
